<compile_context>
chip_gen: v6e
topology: v6e:2x2x1
jax: 0.10.0
libtpu: 0.0.40
codegen_flags: <defaults>
</compile_context>

<pallas_src>
import functools

import numpy as np
import jax
import jax.numpy as jnp
from jax.experimental import pallas as pl
from jax.experimental.pallas import tpu as pltpu

# ----------------------------- problem sizes --------------------------------
N = 8              # nodes per graph
E = 32             # edges per graph
DN = 16            # in_node_dim == out_node_dim (required by the residual)
DE = 8             # in_edge_dim == out_edge_dim (required by the residual)
H = 4              # attention heads
G = 2              # graphs per call (batched over a 'parallel' grid axis)
HDE = H * DE       # 32
HDN = H * DN       # 64
NH = N * H         # 32  flat (dst-node x head) layout used for the edge softmax
NE = N + E         # 40  rows of the per-graph feature / output slab
LANES = 128
NEG_SLOPE = 0.01   # F.leaky_relu default

# constant-slab row offsets: everything static lives in ONE (432, 128) slab
R_WF = 0                     # (128,128) fused feature weights (+ b_egat row)
R_WP = R_WF + LANES          # (128,128) node projection w_pn on h_src lanes
R_WE = R_WP + LANES          # ( 32,128) [attn tiled per dst | w_pe]
R_CL = R_WE + HDE            # ( 32,128) alpha -> h_src-lane collapse matrix
R_B = R_CL + NH              # (  8,128) bias row (b_pn | b_pe); rows 1..7 pad
R_GS = R_B + 8               # ( 64,  8) stacked incidence [gsrc ; gdst]
R_GT = R_GS + 2 * E          # (  8, 32) gdst^T
R_GR = R_GT + N              # ( 32, 32) gdst replicated per head
CONST_ROWS = R_GR + E        # 432


# ------------------------------- Pallas kernel ------------------------------
def symgnn_kernel(feat_ref, cs_ref, out_ref):
    feats = feat_ref[...]                          # (NE, 128) one graph
    cs = cs_ref[...]                               # (432, 128) static slab

    dot = functools.partial(jnp.dot, preferred_element_type=jnp.float32)

    w_fused = cs[R_WF:R_WF + LANES, :]             # (128,128)
    w_pn = cs[R_WP:R_WP + LANES, :]                # (128,128)
    w_edge = cs[R_WE:R_WE + HDE, :]                # (32,128)
    collapse = cs[R_CL:R_CL + NH, :]               # (32,128) precomputed const
    bias_row = cs[R_B:R_B + 1, :]                  # (1,128)  b_pn | b_pe
    g_stack = cs[R_GS:R_GS + 2 * E, 0:N]           # (64,8)   [gsrc ; gdst]
    gdst_t = cs[R_GT:R_GT + N, 0:E]                # (8,32)
    gdst_rep = cs[R_GR:R_GR + E, 0:NH]             # (32,32)

    # (1) ONE fused feature matmul for node AND edge rows:
    #     node rows -> lanes [0:32]=f_ni  [32:64]=f_nj  [64:128]=h_src
    #     edge rows -> lanes [0:32]=f_fij + b_egat (ones lane in feat slab)
    fused = dot(feats, w_fused)                    # (40,128)

    # (2) one stacked gather matmul through [gsrc ; gdst]
    gathered = dot(g_stack, fused[0:N, :])         # (64,128)
    src_g = gathered[0:E, :]                       # f_ni | f_nj | h_src at src
    f_nj_dst = gathered[E:2 * E, HDE:2 * HDE]      # f_nj at dst (only offset slice)

    # (3) EGATConv edge update + leaky_relu
    f_pre = src_g[:, 0:HDE] + f_nj_dst + fused[N:, 0:HDE]
    f_out = jnp.where(f_pre > 0, f_pre, NEG_SLOPE * f_pre)   # (E, H*DE)

    # (4) fused edge matmul: lanes [0:NH]=attn logits tiled per dst node,
    #     lanes [NH:NH+DE]=edge projection (same lanes as the efeat residual)
    edge2 = dot(f_out, w_edge)                     # (E,128)

    # (5) per-destination edge softmax in the flat (E, N*H) layout
    logits_t = edge2[:, 0:NH]                      # zero-offset slice
    masked = jnp.where(gdst_rep > 0.5, logits_t, jnp.float32(-1e30))
    node_max = jnp.max(masked, axis=0, keepdims=True)          # exact segment max
    e_flat = gdst_rep * jnp.exp(masked - node_max)
    denom = jnp.sum(e_flat, axis=0, keepdims=True)
    alpha = e_flat * pl.reciprocal(jnp.maximum(denom, jnp.float32(1e-30)),
                                   approx=True)

    # (6) expand per-head alpha straight onto the h_src lanes [64:128]
    a_exp = dot(alpha, collapse)                   # (E,128); lanes [0:64] are 0

    # (7) weighted aggregation onto destination nodes (no lane slice needed:
    #     a_exp zeroes the non-h_src lanes of the gathered src rows)
    weighted = src_g * a_exp                       # (E,128)
    h_out = dot(gdst_t, weighted)                  # (N,128)

    # (8) flatten(1) + Linear projection + bias + residual, lane-dense stores
    out_ref[0:N, :] = dot(h_out, w_pn) + bias_row + feats[0:N, :]
    out_ref[N:, :] = edge2 + bias_row + feats[N:, :]


# --------------------- one-time static packing (setup) ----------------------
def pack_param_slab(params):
    """Parameter-dependent rows of the constant slab (built ONCE at setup)."""
    f32 = np.float32
    p = {k: np.asarray(v, f32) for k, v in params.items()}

    wf = np.zeros((LANES, LANES), f32)             # fused feature weights
    wf[0:DN, 0:HDE] = p['w_ni']
    wf[0:DN, HDE:2 * HDE] = p['w_nj']
    wf[0:DN, 2 * HDE:2 * HDE + HDN] = p['w_node']
    wf[HDE:HDE + DE, 0:HDE] = p['w_fij']           # edge-feature contraction lanes
    wf[HDE + DE, 0:HDE] = p['b_egat'][0]           # hit by the ones lane

    wp = np.zeros((LANES, LANES), f32)             # node projection
    wp[2 * HDE:, 0:DN] = p['w_pn']                 # contracts over h_src lanes

    # block-diagonal attention tiled per destination node:
    # attn_tiled[h*DE + d, n*H + h] = attn[h, d]
    attn_bd = np.zeros((HDE, H), f32)
    for h in range(H):
        attn_bd[h * DE:(h + 1) * DE, h] = p['attn'][h]
    we = np.zeros((HDE, LANES), f32)
    we[:, 0:NH] = np.tile(attn_bd, (1, N))
    we[:, NH:NH + DE] = p['w_pe']

    # collapse[(n*H + h), 64 + h*DN + d] = 1  (alpha -> per-feature h_src lanes)
    rows = np.arange(NH)
    lanes = np.arange(LANES)
    cl = ((lanes[None, :] >= 2 * HDE)
          & ((rows % H)[:, None] == (lanes[None, :] - 2 * HDE) // DN)
          ).astype(f32)

    bias = np.zeros((8, LANES), f32)
    bias[0, 0:DN] = p['b_pn'][0]
    bias[0, HDE:HDE + DE] = p['b_pe'][0]

    return np.concatenate([wf, wp, we, cl, bias], axis=0)      # (328,128)


def pack_graph_slab(src, dst):
    """Graph-dependent rows of the constant slab (built once per static graph)."""
    f32 = np.float32
    src = np.asarray(src)
    dst = np.asarray(dst)
    gsrc = np.eye(N, dtype=f32)[src]               # (E,N)
    gdst = np.eye(N, dtype=f32)[dst]               # (E,N)

    gs = np.zeros((2 * E + N + E, LANES), f32)     # (104,128)
    gs[0:E, 0:N] = gsrc
    gs[E:2 * E, 0:N] = gdst
    gs[2 * E:2 * E + N, 0:E] = gdst.T
    gs[2 * E + N:, 0:NH] = np.repeat(gdst, H, axis=1)
    return gs


def pack_constants(params, src, dst):
    const = np.concatenate([pack_param_slab(params),
                            pack_graph_slab(src, dst)], axis=0)
    assert const.shape == (CONST_ROWS, LANES)
    # base per-call feature slab: ones lane on edge rows carries b_egat
    base = np.zeros((NE, LANES), np.float32)
    base[N:, HDE + DE] = 1.0
    return jnp.asarray(const), jnp.asarray(base)


# ------------------------------ per-call wrapper -----------------------------
def _cost_estimate(g):
    mm = (NE * LANES * LANES + 2 * E * N * LANES + E * HDE * LANES
          + E * NH * LANES + N * E * LANES + N * LANES * LANES)
    return pl.CostEstimate(
        flops=2 * mm * g,
        transcendentals=(E * NH + NH) * g,
        bytes_accessed=CONST_ROWS * LANES * 4 + g * 2 * NE * LANES * 4)


@jax.jit
def sym_gnn_layer(nfeats, efeats, const_slab, base_feat):
    """nfeats (G,N,DN), efeats (G,E,DE) -> nh (G,N,DN), eh (G,E,DE)."""
    g = nfeats.shape[0]
    # per-call packing = exactly two dynamic-update-slices, fused under jit
    feat = jnp.broadcast_to(base_feat, (g, NE, LANES))
    feat = feat.at[:, :N, :DN].set(nfeats)
    feat = feat.at[:, N:, HDE:HDE + DE].set(efeats)

    out = pl.pallas_call(
        symgnn_kernel,
        out_shape=jax.ShapeDtypeStruct((g, NE, LANES), jnp.float32),
        grid=(g,),
        in_specs=[
            pl.BlockSpec((None, NE, LANES), lambda i: (i, 0, 0)),
            pl.BlockSpec((CONST_ROWS, LANES), lambda i: (0, 0)),
        ],
        out_specs=pl.BlockSpec((None, NE, LANES), lambda i: (i, 0, 0)),
        compiler_params=pltpu.CompilerParams(
            dimension_semantics=("parallel",)),
        cost_estimate=_cost_estimate(g),
    )(feat, const_slab)

    nh = out[:, :N, :DN]
    eh = out[:, N:, HDE:HDE + DE]
    return nh, eh


# --------------------------- pure-JAX reference ------------------------------
def reference_single(nfeats, efeats, src, dst, params):
    f_ni = nfeats @ params['w_ni']
    f_nj = nfeats @ params['w_nj']
    f_fij = efeats @ params['w_fij']
    f_out = f_ni[src] + f_nj[dst] + f_fij + params['b_egat'][0]
    f_out = jnp.where(f_out > 0, f_out, NEG_SLOPE * f_out)             # (E, H*DE)
    logits = (f_out.reshape(E, H, DE) * params['attn'][None]).sum(-1)   # (E, H)
    mx = jax.ops.segment_max(logits, dst, num_segments=N)
    ex = jnp.exp(logits - mx[dst])
    denom = jax.ops.segment_sum(ex, dst, num_segments=N)
    alpha = ex / denom[dst]                                             # (E, H)
    h_src = (nfeats @ params['w_node']).reshape(N, H, DN)
    msgs = h_src[src] * alpha[:, :, None]
    h_out = jax.ops.segment_sum(msgs, dst, num_segments=N).reshape(N, HDN)
    nh = h_out @ params['w_pn'] + params['b_pn'][0] + nfeats
    eh = f_out @ params['w_pe'] + params['b_pe'][0] + efeats
    return nh, eh


# ---------------------------------- main -------------------------------------
if __name__ == "__main__":
    key = jax.random.PRNGKey(0)
    keys = jax.random.split(key, 16)

    nfeats = jax.random.normal(keys[0], (G, N, DN), jnp.float32)
    efeats = jax.random.normal(keys[1], (G, E, DE), jnp.float32)
    src = jax.random.randint(keys[2], (E,), 0, N, jnp.int32)
    dst = jax.random.randint(keys[3], (E,), 0, N, jnp.int32)

    s = 0.1
    params = {
        # EGATConv parameters
        'w_ni':   s * jax.random.normal(keys[4],  (DN, H * DE), jnp.float32),
        'w_nj':   s * jax.random.normal(keys[5],  (DN, H * DE), jnp.float32),
        'w_fij':  s * jax.random.normal(keys[6],  (DE, H * DE), jnp.float32),
        'b_egat': s * jax.random.normal(keys[7],  (1, H * DE), jnp.float32),
        'attn':   s * jax.random.normal(keys[8],  (H, DE), jnp.float32),
        'w_node': s * jax.random.normal(keys[9],  (DN, H * DN), jnp.float32),
        # SymGNNLayer projection (Linear) parameters, stored pre-transposed
        'w_pn':   s * jax.random.normal(keys[10], (H * DN, DN), jnp.float32),
        'b_pn':   s * jax.random.normal(keys[11], (1, DN), jnp.float32),
        'w_pe':   s * jax.random.normal(keys[12], (H * DE, DE), jnp.float32),
        'b_pe':   s * jax.random.normal(keys[13], (1, DE), jnp.float32),
    }

    # one-time setup: all static packing happens here, OFF the per-call path
    const_slab, base_feat = pack_constants(params, src, dst)

    nh, eh = sym_gnn_layer(nfeats, efeats, const_slab, base_feat)
    jax.block_until_ready((nh, eh))

    nh_ref, eh_ref = jax.vmap(reference_single,
                              in_axes=(0, 0, None, None, None))(
        nfeats, efeats, src, dst, params)
    assert jnp.allclose(nh, nh_ref, rtol=2e-2, atol=2e-2), "node output mismatch"
    assert jnp.allclose(eh, eh_ref, rtol=2e-2, atol=2e-2), "edge output mismatch"

    print("KERNEL_OK")
</pallas_src>

<mosaic_0001>
module attributes {stable_mosaic.version = 11 : i64} {
  func.func @symgnn_kernel(%arg0: i32, %arg1: memref<1x40x128xf32, #tpu.memory_space<vmem>>, %arg2: memref<432x128xf32, #tpu.memory_space<vmem>>, %arg3: memref<1x40x128xf32, #tpu.memory_space<vmem>>) attributes {dimension_semantics = [#tpu.dimension_semantics<parallel>], iteration_bounds = array<i64: 2>, scalar_prefetch = 0 : i64, scratch_operands = 0 : i64, tpu.core_type = #tpu.core_type<tc>, window_params = [{transform_indices = @transform_0, window_bounds = array<i64: 1, 40, 128>}, {pipeline_mode = #tpu.pipeline_mode<synchronous>, transform_indices = @transform_1, window_bounds = array<i64: 432, 128>}, {transform_indices = @transform_2, window_bounds = array<i64: 1, 40, 128>}]} {
    %c0 = arith.constant 0 : index
    %c0_0 = arith.constant 0 : index
    %c0_1 = arith.constant 0 : index
    %0 = vector.load %arg1[%c0, %c0_0, %c0_1] : memref<1x40x128xf32, #tpu.memory_space<vmem>>, vector<1x40x128xf32>
    %1 = vector.shape_cast %0 : vector<1x40x128xf32> to vector<40x128xf32>
    %c0_2 = arith.constant 0 : index
    %c0_3 = arith.constant 0 : index
    %2 = vector.load %arg2[%c0_2, %c0_3] : memref<432x128xf32, #tpu.memory_space<vmem>>, vector<432x128xf32>
    %3 = vector.extract_strided_slice %2 {offsets = [0, 0], sizes = [128, 128], strides = [1, 1]} : vector<432x128xf32> to vector<128x128xf32>
    %4 = vector.extract_strided_slice %2 {offsets = [128, 0], sizes = [128, 128], strides = [1, 1]} : vector<432x128xf32> to vector<128x128xf32>
    %5 = vector.extract_strided_slice %2 {offsets = [256, 0], sizes = [32, 128], strides = [1, 1]} : vector<432x128xf32> to vector<32x128xf32>
    %6 = vector.extract_strided_slice %2 {offsets = [288, 0], sizes = [32, 128], strides = [1, 1]} : vector<432x128xf32> to vector<32x128xf32>
    %7 = vector.extract_strided_slice %2 {offsets = [320, 0], sizes = [1, 128], strides = [1, 1]} : vector<432x128xf32> to vector<1x128xf32>
    %8 = vector.extract_strided_slice %2 {offsets = [328, 0], sizes = [64, 8], strides = [1, 1]} : vector<432x128xf32> to vector<64x8xf32>
    %9 = vector.extract_strided_slice %2 {offsets = [392, 0], sizes = [8, 32], strides = [1, 1]} : vector<432x128xf32> to vector<8x32xf32>
    %10 = vector.extract_strided_slice %2 {offsets = [400, 0], sizes = [32, 32], strides = [1, 1]} : vector<432x128xf32> to vector<32x32xf32>
    %cst = arith.constant dense<0.000000e+00> : vector<40x128xf32>
    %11 = tpu.matmul %1, %3, %cst {dimension_numbers = #tpu.dot_dimension_numbers<[1], [0], [0], [1], [0, 0, 1, 1], [], []>} : vector<40x128xf32>, vector<128x128xf32>, vector<40x128xf32> -> vector<40x128xf32>
    %12 = vector.extract_strided_slice %11 {offsets = [0, 0], sizes = [8, 128], strides = [1, 1]} : vector<40x128xf32> to vector<8x128xf32>
    %cst_4 = arith.constant dense<0.000000e+00> : vector<64x128xf32>
    %13 = tpu.matmul %8, %12, %cst_4 {dimension_numbers = #tpu.dot_dimension_numbers<[1], [0], [0], [1], [0, 0, 1, 1], [], []>} : vector<64x8xf32>, vector<8x128xf32>, vector<64x128xf32> -> vector<64x128xf32>
    %14 = vector.extract_strided_slice %13 {offsets = [0, 0], sizes = [32, 128], strides = [1, 1]} : vector<64x128xf32> to vector<32x128xf32>
    %15 = vector.extract_strided_slice %13 {offsets = [32, 32], sizes = [32, 32], strides = [1, 1]} : vector<64x128xf32> to vector<32x32xf32>
    %16 = vector.extract_strided_slice %14 {offsets = [0, 0], sizes = [32, 32], strides = [1, 1]} : vector<32x128xf32> to vector<32x32xf32>
    %17 = arith.addf %16, %15 : vector<32x32xf32>
    %18 = vector.extract_strided_slice %11 {offsets = [8, 0], sizes = [32, 32], strides = [1, 1]} : vector<40x128xf32> to vector<32x32xf32>
    %19 = arith.addf %17, %18 : vector<32x32xf32>
    %cst_5 = arith.constant 0.000000e+00 : f32
    %20 = vector.broadcast %cst_5 : f32 to vector<32x32xf32>
    %21 = arith.cmpf ogt, %19, %20 : vector<32x32xf32>
    %cst_6 = arith.constant 0.00999999977 : f32
    %22 = vector.broadcast %cst_6 : f32 to vector<32x32xf32>
    %23 = arith.mulf %22, %19 : vector<32x32xf32>
    %24 = arith.select %21, %19, %23 : vector<32x32xi1>, vector<32x32xf32>
    %cst_7 = arith.constant dense<0.000000e+00> : vector<32x128xf32>
    %25 = tpu.matmul %24, %5, %cst_7 {dimension_numbers = #tpu.dot_dimension_numbers<[1], [0], [0], [1], [0, 0, 1, 1], [], []>} : vector<32x32xf32>, vector<32x128xf32>, vector<32x128xf32> -> vector<32x128xf32>
    %26 = vector.extract_strided_slice %25 {offsets = [0, 0], sizes = [32, 32], strides = [1, 1]} : vector<32x128xf32> to vector<32x32xf32>
    %cst_8 = arith.constant 5.000000e-01 : f32
    %27 = vector.broadcast %cst_8 : f32 to vector<32x32xf32>
    %28 = arith.cmpf ogt, %10, %27 : vector<32x32xf32>
    %cst_9 = arith.constant -1.000000e+30 : f32
    %29 = vector.broadcast %cst_9 : f32 to vector<32x32xf32>
    %30 = arith.select %28, %26, %29 : vector<32x32xi1>, vector<32x32xf32>
    %cst_10 = arith.constant dense<0xFF800000> : vector<32xf32>
    %31 = vector.multi_reduction <maximumf>, %30, %cst_10 [0] : vector<32x32xf32> to vector<32xf32>
    %32 = vector.shape_cast %31 : vector<32xf32> to vector<1x32xf32>
    %33 = vector.broadcast %32 : vector<1x32xf32> to vector<32x32xf32>
    %34 = arith.subf %30, %33 : vector<32x32xf32>
    %35 = math.exp %34 : vector<32x32xf32>
    %36 = arith.mulf %10, %35 : vector<32x32xf32>
    %cst_11 = arith.constant dense<0.000000e+00> : vector<32xf32>
    %37 = vector.multi_reduction <add>, %36, %cst_11 [0] : vector<32x32xf32> to vector<32xf32>
    %38 = vector.shape_cast %37 : vector<32xf32> to vector<1x32xf32>
    %cst_12 = arith.constant 1.000000e-30 : f32
    %39 = vector.broadcast %cst_12 : f32 to vector<1x32xf32>
    %40 = arith.maximumf %38, %39 : vector<1x32xf32>
    %41 = tpu.reciprocal %40 {approx = true} : vector<1x32xf32> -> vector<1x32xf32>
    %42 = vector.broadcast %41 : vector<1x32xf32> to vector<32x32xf32>
    %43 = arith.mulf %36, %42 : vector<32x32xf32>
    %cst_13 = arith.constant dense<0.000000e+00> : vector<32x128xf32>
    %44 = tpu.matmul %43, %6, %cst_13 {dimension_numbers = #tpu.dot_dimension_numbers<[1], [0], [0], [1], [0, 0, 1, 1], [], []>} : vector<32x32xf32>, vector<32x128xf32>, vector<32x128xf32> -> vector<32x128xf32>
    %45 = arith.mulf %14, %44 : vector<32x128xf32>
    %cst_14 = arith.constant dense<0.000000e+00> : vector<8x128xf32>
    %46 = tpu.matmul %9, %45, %cst_14 {dimension_numbers = #tpu.dot_dimension_numbers<[1], [0], [0], [1], [0, 0, 1, 1], [], []>} : vector<8x32xf32>, vector<32x128xf32>, vector<8x128xf32> -> vector<8x128xf32>
    %cst_15 = arith.constant dense<0.000000e+00> : vector<8x128xf32>
    %47 = tpu.matmul %46, %4, %cst_15 {dimension_numbers = #tpu.dot_dimension_numbers<[1], [0], [0], [1], [0, 0, 1, 1], [], []>} : vector<8x128xf32>, vector<128x128xf32>, vector<8x128xf32> -> vector<8x128xf32>
    %48 = vector.broadcast %7 : vector<1x128xf32> to vector<8x128xf32>
    %49 = arith.addf %47, %48 : vector<8x128xf32>
    %50 = vector.extract_strided_slice %1 {offsets = [0, 0], sizes = [8, 128], strides = [1, 1]} : vector<40x128xf32> to vector<8x128xf32>
    %51 = arith.addf %49, %50 : vector<8x128xf32>
    %c0_16 = arith.constant 0 : index
    %c0_17 = arith.constant 0 : index
    %c0_18 = arith.constant 0 : index
    %52 = vector.load %arg3[%c0_16, %c0_17, %c0_18] : memref<1x40x128xf32, #tpu.memory_space<vmem>>, vector<1x8x128xf32>
    %53 = vector.shape_cast %52 : vector<1x8x128xf32> to vector<8x128xf32>
    %54 = vector.shape_cast %51 : vector<8x128xf32> to vector<1x8x128xf32>
    tpu.vector_store %arg3[%c0_16, %c0_17, %c0_18], %54 {strides = array<i32>} : memref<1x40x128xf32, #tpu.memory_space<vmem>>, vector<1x8x128xf32>,
    %55 = vector.broadcast %7 : vector<1x128xf32> to vector<32x128xf32>
    %56 = arith.addf %25, %55 : vector<32x128xf32>
    %57 = vector.extract_strided_slice %1 {offsets = [8, 0], sizes = [32, 128], strides = [1, 1]} : vector<40x128xf32> to vector<32x128xf32>
    %58 = arith.addf %56, %57 : vector<32x128xf32>
    %c0_19 = arith.constant 0 : index
    %c8 = arith.constant 8 : index
    %c0_20 = arith.constant 0 : index
    %59 = vector.load %arg3[%c0_19, %c8, %c0_20] : memref<1x40x128xf32, #tpu.memory_space<vmem>>, vector<1x32x128xf32>
    %60 = vector.shape_cast %59 : vector<1x32x128xf32> to vector<32x128xf32>
    %61 = vector.shape_cast %58 : vector<32x128xf32> to vector<1x32x128xf32>
    tpu.vector_store %arg3[%c0_19, %c8, %c0_20], %61 {strides = array<i32>} : memref<1x40x128xf32, #tpu.memory_space<vmem>>, vector<1x32x128xf32>,
    return
  }
  func.func @transform_0(%arg0: i32) -> (i32, i32, i32) {
    %c0_i32 = arith.constant 0 : i32
    %c0_i32_0 = arith.constant 0 : i32
    %c0_i32_1 = arith.constant 0 : i32
    return %arg0, %c0_i32, %c0_i32_0 : i32, i32, i32
  }
  func.func @transform_1(%arg0: i32) -> (i32, i32) {
    %c0_i32 = arith.constant 0 : i32
    %c0_i32_0 = arith.constant 0 : i32
    %c0_i32_1 = arith.constant 0 : i32
    return %c0_i32, %c0_i32_0 : i32, i32
  }
  func.func @transform_2(%arg0: i32) -> (i32, i32, i32) {
    %c0_i32 = arith.constant 0 : i32
    %c0_i32_0 = arith.constant 0 : i32
    %c0_i32_1 = arith.constant 0 : i32
    return %arg0, %c0_i32, %c0_i32_0 : i32, i32, i32
  }
}

</mosaic_0001>

<bundles_post_ra>
// kernel: sym_gnn_layer.1
= control target key start
LH: loop header
LB: loop body
LE: loop exit
PB: predicated region body
PF: predicated region fallthrough
CT: control target
= control target key end

     0   :  { %7 = vsyncpa [#allocation3], 0  ;;  %s1282_s9 = smov 0   ;;  %s1453_s0 = inlined_call_operand.vmem [shape: f32[2,40,128], index: 0, kind: input, shape index: {}]   ;;  %s1454_s1 = inlined_call_operand.hbm [shape: f32[432,128], index: 1, kind: input, shape index: {}]   ;;  %s1455_s2 = inlined_call_operand.vmem [shape: f32[2,40,128], index: 2, kind: output, shape index: {}]  }
   0x1 LB: > { %s1288_s10 = sadd.s32 4294967295, %s1259_s9   ;;  %p959_p0 = scmp.ge.s32.totalorder %s1259_s9, 1  ;;  %s1259_s9 = sphi %s1282_s9, %s13_s9  }
   0x2   : > { %p91_p1 = scmp.lt.s32.totalorder %s1259_s9, 3  ;;  %s1261_s11 = smov [#allocation2]  }
   0x3   : > { %s103_s12 = sshll.u32 %s1261_s11, 4  ;;  %p1197_p3 = scmp.eq.s32.totalorder %s1288_s10, 0  ;;  %s104_s12 = int_to_ptr.vmem [resolvable:$true] %s103_s12 }
   0x4   : > { %p1292_p2 = pnand %p959_p0, %p91_p1  ;;  %s1234_s14 = scalar_lea.vmem %s104_s12, 6912 }
   0x5   : > { %p1235_p7 = scmp.ne.s32.totalorder %s104_s12, %s1234_s14  ;;  %p1242_p10 = scmp.lt.s32.totalorder %s104_s12, %s104_s12 }
   0x6   : > { %p1193_p4 = pneg %p1292_p2  ;;  %p1243_p11 = scmp.lt.s32.totalorder %s1234_s14, %s1234_s14 }
   0x8   : > { %p1194_p5 = pnand %p1197_p3, %p1193_p4  ;;  %p1244_p12 = por %p1243_p11, %p1242_p10 }
   0xa   : > { %p1225_p6 = pneg %p1194_p5 }
   0xc   : > { %p1237_p8 = pnand %p1235_p7, %p1225_p6 }
   0xe   : > { %p1238_p9 = pneg %p1237_p8 }
  0x10   : > { %p1245_p13 = pnand %p1244_p12, %p1238_p9 }
  0x12   : > { %1248 = shalt.err (!%p1245_p13)
}
  0x13   : > { %s1262_s15 = smov 128   ;;  %s1263_s16 = smov 8  }
  0x14   : > { %1196 = dma.hbm_to_vmem [thread:$0]  (!%p1194_p5), %s1454_s1, 6912, %s104_s12, [#allocation3], %s1262_s15, %s1262_s15, %s1263_s16  }
  0x15   : > { %127 = sbr.rel (%p1292_p2) target bundleno = 1458 (0x5b2), region = 28 }
  0x1a   : > { %1254 = dma.done.wait (%p1197_p3), [#allocation3], 6912  }
  0x1b   : > { %1256 = vsyncadd (%p1197_p3), [#allocation3], 4294960384  ;;  %v1264_v0 = vmov 0.0   ;;  %vm1265_vm0 = vmmov 0   ;;  %v179_v1 = vld [vmem:[#allocation2 + $0x78] sm:$0xff]  ;;  %v178_v2 = vld [vmem:[#allocation2 + $0x70] sm:$0xff] }
  0x1c   : > { %1053 = vmatprep.subr.mxu0 %v1264_v0  ;;  %1085 = vmatprep.mubr.msk.f32.mxu0 %vm1265_vm0, %v1264_v0  ;;  %v177_v3 = vld [vmem:[#allocation2 + $0x68] sm:$0xff]  ;;  %v176_v4 = vld [vmem:[#allocation2 + $0x60] sm:$0xff]  ;;  %v175_v5 = vld [vmem:[#allocation2 + $0x58] sm:$0xff]  ;;  %p149_p0 = scmp.lt.s32.totalorder %s1288_s10, 1  ;;  %vm308_vm1 = vcmask 64512   ;;  %s1266_s23 = smov 96  }
  0x1d   : > { %1054 = vmatpush3.msra.mxu0 %v179_v1  ;;  %v174_v6 = vld [vmem:[#allocation2 + $0x50] sm:$0xff]  ;;  %v173_v7 = vld [vmem:[#allocation2 + $0x48] sm:$0xff]  ;;  %v172_v8 = vld [vmem:[#allocation2 + $0x40] sm:$0xff]  ;;  %vm474_vm2 = vcmask 261120  }
  0x1e   : > { %1055 = vmatprep.subr.mxu0 %v1264_v0  ;;  %v171_v9 = vld [vmem:[#allocation2 + $0x38] sm:$0xff]  ;;  %v170_v10 = vld [vmem:[#allocation2 + $0x30] sm:$0xff]  ;;  %v169_v11 = vld [vmem:[#allocation2 + $0x28] sm:$0xff]  ;;  %s1458_s10 = smov (!%p149_p0, %s1288_s10), 1 }
  0x1f   : > { %1056 = vmatpush3.msra.mxu0 %v178_v2  ;;  %v168_v12 = vld [vmem:[#allocation2 + $0x20] sm:$0xff]  ;;  %v167_v13 = vld [vmem:[#allocation2 + $0x18] sm:$0xff]  ;;  %s1188_s19 = smul.u32 40, %s1458_s10  ;;  %v166_v14 = vld [vmem:[#allocation2 + $0x10] sm:$0xff] }
  0x20   : > { %1057 = vmatprep.subr.mxu0 %v1264_v0  ;;  %v165_v15 = vld [vmem:[#allocation2 + $0x8] sm:$0xff]  ;;  %v164_v16 = vld [vmem:[#allocation2] sm:$0xff]  ;;  %v206_v24 = vld [vmem:[#allocation2 + $0x150] sm:$0xff] }
  0x21   : > { %1058 = vmatpush3.msra.mxu0 %v177_v3  ;;  %s153_s22 = scalar_lea.vmem %s1453_s0, %s1188_s19  ;;  %v205_v18 = vld [vmem:[#allocation2 + $0x148] sm:$0xff]  ;;  %v207_v25 = vld [vmem:[#allocation2 + $0x158] sm:$0xff]  ;;  %v208_v27 = vld [vmem:[#allocation2 + $0x160] sm:$0xff]  ;;  %s1397_s26 = scalar_lea.vmem %s1455_s2, %s1188_s19 }
  0x22   : > { %1059 = vmatprep.subr.mxu0 %v1264_v0  ;;  %v1337_v17 = vld [vmem:[%s153_s22] sm:$0xff]  ;;  %1102 = vmatprep.mubr.msk.f32.mxu1 %vm308_vm1, %v205_v18  ;;  %v1345_v19 = vld [vmem:[%s153_s22 + $0x8] sm:$0xff]  ;;  %v1350_v20 = vld [vmem:[%s153_s22 + $0x10] sm:$0xff] }
  0x23   : > { %1060 = vmatpush3.msra.mxu0 %v176_v4  ;;  %v1355_v21 = vld [vmem:[%s153_s22 + $0x18] sm:$0xff]  ;;  %v1360_v22 = vld [vmem:[%s153_s22 + $0x20] sm:$0xff]  ;;  %v209_v28 = vld [vmem:[#allocation2 + $0x168] sm:$0xff] }
  0x24   : > { %1061 = vmatprep.subr.mxu0 %v1264_v0  ;;  %v210_v29 = vld [vmem:[#allocation2 + $0x170] sm:$0xff]  ;;  %v211_v30 = vld [vmem:[#allocation2 + $0x178] sm:$0xff]  ;;  %v212_v31 = vld [vmem:[#allocation2 + $0x180] sm:$0xff] }
  0x25   : > { %1062 = vmatpush3.msra.mxu0 %v175_v5  ;;  %v199_v33 = vld [vmem:[#allocation2 + $0x118] sm:$0xff]  ;;  %v198_v34 = vld [vmem:[#allocation2 + $0x110] sm:$0xff]  ;;  %v197_v41 = vld [vmem:[#allocation2 + $0x108] sm:$0xff] }
  0x26   : > { %1063 = vmatprep.subr.mxu0 %v1264_v0  ;;  %v196_v45 = vld [vmem:[#allocation2 + $0x100] sm:$0xff] }
  0x27   : > { %1064 = vmatpush3.msra.mxu0 %v174_v6 }
  0x28   : > { %1065 = vmatprep.subr.mxu0 %v1264_v0 }
  0x29   : > { %1066 = vmatpush3.msra.mxu0 %v173_v7 }
  0x2a   : > { %1067 = vmatprep.subr.mxu0 %v1264_v0 }
  0x2b   : > { %1068 = vmatpush3.msra.mxu0 %v172_v8 }
  0x2c   : > { %1069 = vmatprep.subr.mxu0 %v1264_v0 }
  0x2d   : > { %1070 = vmatpush3.msra.mxu0 %v171_v9  ;;  %v203_v9 = vld [vmem:[#allocation2 + $0x138] sm:$0xff] }
  0x2e   : > { %1071 = vmatprep.subr.mxu0 %v1264_v0 }
  0x2f   : > { %1072 = vmatpush3.msra.mxu0 %v170_v10  ;;  %v202_v10 = vld [vmem:[#allocation2 + $0x130] sm:$0xff] }
  0x30   : > { %1073 = vmatprep.subr.mxu0 %v1264_v0 }
  0x31   : > { %1074 = vmatpush3.msra.mxu0 %v169_v11  ;;  %v201_v11 = vld [vmem:[#allocation2 + $0x128] sm:$0xff] }
  0x32   : > { %1075 = vmatprep.subr.mxu0 %v1264_v0 }
  0x33   : > { %1076 = vmatpush3.msra.mxu0 %v168_v12  ;;  %v200_v12 = vld [vmem:[#allocation2 + $0x120] sm:$0xff] }
  0x34   : > { %1077 = vmatprep.subr.mxu0 %v1264_v0 }
  0x35   : > { %1078 = vmatpush3.msra.mxu0 %v167_v13  ;;  %v802_v13 = vlaneseq }
  0x36   : > { %1079 = vmatprep.subr.mxu0 %v1264_v0 }
  0x37   : > { %1080 = vmatpush3.msra.mxu0 %v166_v14  ;;  %v803_v14 = vshrl.u32 %v802_v13, 7 }
  0x38   : > { %1081 = vmatprep.subr.mxu0 %v1264_v0 }
  0x39   : > { %1082 = vmatpush3.msra.mxu0 %v165_v15  ;;  %v804_v15 = vsub.s32 0, %v803_v14 }
  0x3a   : > { %1083 = vmatprep.subr.mxu0 %v1264_v0 }
  0x3b   : > { %1084 = vmatpush3.msra.mxu0 %v164_v16  ;;  %v204_v16 = vld [vmem:[#allocation2 + $0x140] sm:$0xff] }
  0x3c   : > { %1086 = vmatmul.mubr.f32.vlgmr.msra.gmra.mxu0 %v1337_v17  ;;  %1153 = vmatprep.subr.mxu0 %v1264_v0  ;;  %v1389_v18 = vrot.slane %v204_v16, %v804_v15 }
  0x3d   : > { %1088 = vmatprep.mubr.msk.f32.mxu0 %vm1265_vm0, %v1264_v0 }
  0x40   : > { %1089 = vmatmul.mubr.f32.gmra.mxu0 %v1345_v19 }
  0x41   : > { %1091 = vmatprep.mubr.msk.f32.mxu0 %vm1265_vm0, %v1264_v0 }
  0x44   : > { %1092 = vmatmul.mubr.f32.gmra.mxu0 %v1350_v20 }
  0x45   : > { %1094 = vmatprep.mubr.msk.f32.mxu0 %vm1265_vm0, %v1264_v0 }
  0x48   : > { %1095 = vmatmul.mubr.f32.gmra.mxu0 %v1355_v21 }
  0x49   : > { %1097 = vmatprep.mubr.msk.f32.mxu0 %vm1265_vm0, %v1264_v0 }
  0x4c   : > { %1098 = vmatmul.mubr.f32.gmra.mxu0 %v1360_v22 }
  0x4d   : > { %1185 = vmatprep.mubr.msk.f32.mxu0 %vm1265_vm0, %v1264_v0 }
  0xfc   : > { %v284_v23 = vpop.f32.mrf.mxu0 }
  0xfd   : > { %1100 = vmatprep.subr.mxu1 %v284_v23 }
  0xfe   : > { %v1087_v26 = vpop.f32.mrf.mxu0  ;;  %1101 = vmatpush3.msra.mxu1 %v284_v23  ;;  %v214_v23 = vld [vmem:[#allocation2 + $0x190] sm:$0xff] }
  0xff   : > { %1103 = vmatmul.mubr.msk.f32.vlgmr.msra.gmra.mxu1 %vm308_vm1, %v206_v24  ;;  %1114 = vmatprep.subr.mxu1 %v199_v33  ;;  %v215_v24 = vld [vmem:[#allocation2 + $0x198] sm:$0xff]  ;;  %v217_v26 = vld [vmem:[#allocation2 + $0x1a8] sm:$0xff]  ;;  %vm572_vm7 = vcmp.gt.f32.partialorder %v214_v23, 0.5 }
 0x100   : > { %1105 = vmatprep.mubr.msk.f32.mxu1 %vm308_vm1, %v207_v25  ;;  %v289_v32 = vpop.f32.mrf.mxu0  ;;  %1115 = vmatpush3.msra.mxu1 %v199_v33  ;;  %vm573_vm8 = vcmp.gt.f32.partialorder %v215_v24, 0.5  ;;  %vm575_vm9 = vcmp.gt.f32.partialorder %v217_v26, 0.5 }
 0x101   : > { %1116 = vmatprep.subr.mxu1 %v198_v34 }
 0x102   : > { %v1090_v35 = vpop.f32.mrf.mxu0  ;;  %1117 = vmatpush3.msra.mxu1 %v198_v34 }
 0x103   : > { %1106 = vmatmul.mubr.msk.f32.gmra.mxu1 %vm308_vm1, %v208_v27  ;;  %1118 = vmatprep.subr.mxu1 %v197_v41 }
 0x104   : > { %1108 = vmatprep.mubr.msk.f32.mxu1 %vm308_vm1, %v209_v28  ;;  %v294_v36 = vpop.f32.mrf.mxu0  ;;  %1119 = vmatpush3.msra.mxu1 %v197_v41 }
 0x105   : > { %1120 = vmatprep.subr.mxu1 %v196_v45 }
 0x106   : > { %v1093_v37 = vpop.f32.mrf.mxu0  ;;  %1121 = vmatpush3.msra.mxu1 %v196_v45 }
 0x107   : > { %1109 = vmatmul.mubr.msk.f32.gmra.mxu1 %vm308_vm1, %v210_v29  ;;  %1128 = vmatprep.subr.mxu1 %v203_v9  ;;  %v216_v29 = vld [vmem:[#allocation2 + $0x1a0] sm:$0xff] }
 0x108   : > { %1111 = vmatprep.mubr.msk.f32.mxu1 %vm308_vm1, %v211_v30  ;;  %v299_v39 = vpop.f32.mrf.mxu0  ;;  %vm574_vm10 = vcmp.gt.f32.partialorder %v216_v29, 0.5 }
 0x10a   : > { %v1096_v42 = vpop.f32.mrf.mxu0 }
 0x10b   : > { %1112 = vmatmul.mubr.msk.f32.gmra.mxu1 %vm308_vm1, %v212_v31 }
 0x10c   : > { %v304_v46 = vpop.f32.mrf.mxu0 }
 0x10e   : > { %v1099_v48 = vpop.f32.mrf.mxu0 }
 0x1bf   : > { %v1372_v38 = vpop.f32.mrf.mxu1 }
 0x1c1   : > { %v1374_v40 = vpop.f32.mrf.mxu1 }
 0x1c3   : > { %v1376_v43 = vpop.f32.mrf.mxu1 }
 0x1c5   : > { %v1378_v44 = vpop.f32.mrf.mxu1 }
 0x1c7   : > { %v1110_v47 = vpop.f32.mrf.mxu1 }
 0x1c9   : > { %v419_v49 = vpop.f32.mrf.mxu1 }
 0x1ca   : > { %442 = vrot.lane.b32.xlu0 %v419_v49, %s1266_s23 }
 0x1cb   : > { %v1113_v50 = vpop.f32.mrf.mxu1 }
 0x1cd   : > { %v429_v51 = vpop.f32.mrf.mxu1 }
 0x1ce   : > { %444 = vrot.lane.b32.xlu0 %v1110_v47, %s1266_s23  ;;  %446 = vrot.lane.b32.xlu1 %v429_v51, %s1266_s23 }
 0x1d2   : > { %448 = vrot.lane.b32.xlu1 %v1113_v50, %s1266_s23 }
 0x23c   : > { %v443_v52 = vpop.permute.xlu0 %442 }
 0x23d   : > { %v454_v53 = vadd.f32 %v443_v52, %v1374_v40 }
 0x23f   : > { %v458_v54 = vadd.f32 %v454_v53, %v289_v32 }
 0x240   : > { %v445_v55 = vpop.permute.xlu0 %444  ;;  %v447_v56 = vpop.permute.xlu1 %446 }
 0x241   : > { %v466_v57 = vmul.f32 0.01, %v458_v54  ;;  %v455_v58 = vadd.f32 %v1372_v38, %v445_v55  ;;  %v456_v59 = vadd.f32 %v447_v56, %v1378_v44  ;;  %vm462_vm3 = vcmp.gt.f32.partialorder %v458_v54, 0.0 }
 0x243   : > { %v459_v60 = vadd.f32 %v455_v58, %v294_v36  ;;  %v460_v61 = vadd.f32 %v456_v59, %v299_v39  ;;  %v470_v62 = vsel %vm462_vm3, %v458_v54, %v466_v57 }
 0x244   : > { %v449_v63 = vpop.permute.xlu1 %448  ;;  %1122 = vmatprep.mubr.msk.f32.mxu1 %vm474_vm2, %v470_v62 }
 0x245   : > { %vm463_vm4 = vcmp.gt.f32.partialorder %v459_v60, 0.0  ;;  %v467_v1 = vmul.f32 0.01, %v459_v60  ;;  %vm464_vm5 = vcmp.gt.f32.partialorder %v460_v61, 0.0  ;;  %v468_v2 = vmul.f32 0.01, %v460_v61 }
 0x246   : > { %v457_v3 = vadd.f32 %v1376_v43, %v449_v63 }
 0x247   : > { %v471_v4 = vsel %vm463_vm4, %v459_v60, %v467_v1  ;;  %v472_v5 = vsel %vm464_vm5, %v460_v61, %v468_v2 }
 0x248   : > { %v461_v6 = vadd.f32 %v457_v3, %v304_v46  ;;  %1123 = vmatmul.mubr.msk.f32.vlgmr.msra.gmra.mxu1 %vm474_vm2, %v471_v4 }
 0x249   : > { %1125 = vmatprep.mubr.msk.f32.mxu1 %vm474_vm2, %v472_v5  ;;  %1129 = vmatpush3.msra.mxu1 %v203_v9 }
 0x24a   : > { %vm465_vm6 = vcmp.gt.f32.partialorder %v461_v6, 0.0  ;;  %v469_v7 = vmul.f32 0.01, %v461_v6  ;;  %1130 = vmatprep.subr.mxu1 %v202_v10 }
 0x24b   : > { %1131 = vmatpush3.msra.mxu1 %v202_v10 }
 0x24c   : > { %v473_v8 = vsel %vm465_vm6, %v461_v6, %v469_v7  ;;  %1132 = vmatprep.subr.mxu1 %v201_v11 }
 0x24d   : > { %1126 = vmatmul.mubr.msk.f32.gmra.mxu1 %vm474_vm2, %v473_v8 }
 0x24e   : > { %1133 = vmatpush3.msra.mxu1 %v201_v11 }
 0x24f   : > { %1134 = vmatprep.subr.mxu1 %v200_v12 }
 0x250   : > { %1135 = vmatpush3.msra.mxu1 %v200_v12 }
 0x251   : > { %1142 = vmatprep.subr.mxu1 %v1264_v0 }
 0x308   : > { %v1124_v25 = vpop.f32.mrf.mxu1 }
 0x309   : > { %v879_v27 = vadd.f32 %v1124_v25, %v1389_v18  ;;  %v577_v35 = vsel %vm573_vm8, %v1124_v25, -1e+30 }
 0x30a   : > { %v553_v28 = vpop.f32.mrf.mxu1  ;;  %v581_v46 = vsel %vm474_vm2, %v577_v35, -inf }
 0x30b   : > { %v883_v30 = vadd.f32 %v879_v27, %v1350_v20  ;;  %v878_v31 = vadd.f32 %v1389_v18, %v553_v28  ;;  %v576_v32 = vsel %vm572_vm7, %v553_v28, -1e+30 }
 0x30c   : > { %v580_v39 = vsel %vm474_vm2, %v576_v32, -inf }
 0x30d   : > { %887 = vst [vmem:[%s1397_s26 + $0x10] sm:$0xff] %v883_v30  ;;  %v882_v33 = vadd.f32 %v878_v31, %v1345_v19  ;;  %v1127_v34 = vpop.f32.mrf.mxu1  ;;  %v584_v48 = vmax.f32 %v580_v39, %v581_v46  ;;  %v191_v39 = vld [vmem:[#allocation2 + $0xd8] sm:$0xff]  ;;  %v186_v46 = vld [vmem:[#allocation2 + $0xb0] sm:$0xff] }
 0x30e   : > { %v579_v36 = vsel %vm575_vm9, %v1127_v34, -1e+30  ;;  %v881_v37 = vadd.f32 %v1127_v34, %v1389_v18  ;;  %v195_v34 = vld [vmem:[#allocation2 + $0xf8] sm:$0xff] }
 0x30f   : > { %886 = vst [vmem:[%s1397_s26 + $0x8] sm:$0xff] %v882_v33  ;;  %v563_v41 = vpop.f32.mrf.mxu1  ;;  %v583_v19 = vsel %vm474_vm2, %v579_v36, -inf  ;;  %1154 = vmatpush3.msra.mxu0 %v195_v34 }
 0x310   : > { %v885_v20 = vadd.f32 %v881_v37, %v1360_v22  ;;  %v578_v42 = vsel %vm574_vm10, %v563_v41, -1e+30  ;;  %v880_v45 = vadd.f32 %v1389_v18, %v563_v41  ;;  %1155 = vmatprep.subr.mxu0 %v1264_v0  ;;  %v192_v37 = vld [vmem:[#allocation2 + $0xe0] sm:$0xff]  ;;  %v190_v41 = vld [vmem:[#allocation2 + $0xd0] sm:$0xff] }
 0x311   : > { %v582_v47 = vsel %vm474_vm2, %v578_v42, -inf }
 0x312   : > { %889 = vst [vmem:[%s1397_s26 + $0x20] sm:$0xff] %v885_v20  ;;  %v585_v49 = vmax.f32 %v582_v47, %v583_v19  ;;  %v884_v50 = vadd.f32 %v880_v45, %v1355_v21  ;;  %v189_v20 = vld [vmem:[#allocation2 + $0xc8] sm:$0xff]  ;;  %v187_v45 = vld [vmem:[#allocation2 + $0xb8] sm:$0xff]  ;;  %v184_v47 = vld [vmem:[#allocation2 + $0xa0] sm:$0xff] }
 0x313   : > { %v185_v19 = vld [vmem:[#allocation2 + $0xa8] sm:$0xff] }
 0x314   : > { %v586_v51 = vmax.f32 %v584_v48, %v585_v49  ;;  %888 = vst [vmem:[%s1397_s26 + $0x18] sm:$0xff] %v884_v50  ;;  %v183_v48 = vld [vmem:[#allocation2 + $0x98] sm:$0xff]  ;;  %v182_v49 = vld [vmem:[#allocation2 + $0x90] sm:$0xff]  ;;  %v181_v50 = vld [vmem:[#allocation2 + $0x88] sm:$0xff] }
 0x316   : > { %v587_v52 = vrot.slane %v586_v51, 4 }
 0x318   : > { %v588_v53 = vmax.f32 %v586_v51, %v587_v52 }
 0x31a   : > { %v589_v54 = vrot.slane %v588_v53, 2 }
 0x31c   : > { %v590_v22 = vmax.f32 %v588_v53, %v589_v54 }
 0x31e   : > { %v591_v55 = vrot.slane %v590_v22, 1 }
 0x320   : > { %v592_v56 = vmax.f32 %v590_v22, %v591_v55 }
 0x322   : > { %v593_v57 = vsub.f32 %v576_v32, %v592_v56  ;;  %v594_v58 = vsub.f32 %v577_v35, %v592_v56  ;;  %v595_v59 = vsub.f32 %v578_v42, %v592_v56  ;;  %v596_v60 = vsub.f32 %v579_v36, %v592_v56  ;;  %v194_v35 = vld [vmem:[#allocation2 + $0xf0] sm:$0xff]  ;;  %v193_v36 = vld [vmem:[#allocation2 + $0xe8] sm:$0xff]  ;;  %v188_v42 = vld [vmem:[#allocation2 + $0xc0] sm:$0xff] }
 0x323   : > { %1156 = vmatpush3.msra.mxu0 %v194_v35 }
 0x324   : > { %v597_v61 = vmul.f32 1.442695, %v593_v57  ;;  %v599_v62 = vmul.f32 1.442695, %v594_v58  ;;  %v601_v63 = vmul.f32 1.442695, %v595_v59  ;;  %1157 = vmatprep.subr.mxu0 %v1264_v0 }
 0x325   : > { %v603_v1 = vmul.f32 1.442695, %v596_v60  ;;  %1158 = vmatpush3.msra.mxu0 %v193_v36  ;;  %v213_v58 = vld [vmem:[#allocation2 + $0x188] sm:$0xff] }
 0x326   : > { %1213 = vpow2.f32 %v597_v61  ;;  %1159 = vmatprep.subr.mxu0 %v1264_v0 }
 0x327   : > { %1215 = vpow2.f32 %v599_v62  ;;  %1160 = vmatpush3.msra.mxu0 %v192_v37 }
 0x328   : > { %1217 = vpow2.f32 %v601_v63  ;;  %1161 = vmatprep.subr.mxu0 %v1264_v0 }
 0x329   : > { %1219 = vpow2.f32 %v603_v1  ;;  %1162 = vmatpush3.msra.mxu0 %v191_v39 }
 0x32a   : > { %1163 = vmatprep.subr.mxu0 %v1264_v0 }
 0x32b   : > { %1164 = vmatpush3.msra.mxu0 %v190_v41 }
 0x32c   : > { %1165 = vmatprep.subr.mxu0 %v1264_v0 }
 0x32d   : > { %1166 = vmatpush3.msra.mxu0 %v189_v20 }
 0x32e   : > { %1167 = vmatprep.subr.mxu0 %v1264_v0 }
 0x32f   : > { %1168 = vmatpush3.msra.mxu0 %v188_v42 }
 0x330   : > { %1169 = vmatprep.subr.mxu0 %v1264_v0 }
 0x331   : > { %1170 = vmatpush3.msra.mxu0 %v187_v45 }
 0x332   : > { %1171 = vmatprep.subr.mxu0 %v1264_v0 }
 0x333   : > { %v1214_v21 = vpop.eup %1213  ;;  %1172 = vmatpush3.msra.mxu0 %v186_v46 }
 0x334   : > { %v1216_v2 = vpop.eup %1215  ;;  %v605_v3 = vmul.f32 %v1214_v21, %v214_v23  ;;  %1173 = vmatprep.subr.mxu0 %v1264_v0 }
 0x335   : > { %v1218_v4 = vpop.eup %1217  ;;  %v606_v5 = vmul.f32 %v1216_v2, %v215_v24  ;;  %1174 = vmatpush3.msra.mxu0 %v185_v19 }
 0x336   : > { %v1220_v6 = vpop.eup %1219  ;;  %v607_v7 = vmul.f32 %v1218_v4, %v216_v29  ;;  %v609_v8 = vsel %vm474_vm2, %v605_v3, 0.0  ;;  %1175 = vmatprep.subr.mxu0 %v1264_v0 }
 0x337   : > { %v608_v9 = vmul.f32 %v1220_v6, %v217_v26  ;;  %v610_v10 = vsel %vm474_vm2, %v606_v5, 0.0  ;;  %1176 = vmatpush3.msra.mxu0 %v184_v47 }
 0x338   : > { %v611_v11 = vadd.f32 %v610_v10, %v609_v8  ;;  %v612_v12 = vsel %vm474_vm2, %v607_v7, 0.0  ;;  %1177 = vmatprep.subr.mxu0 %v1264_v0 }
 0x339   : > { %v614_v14 = vsel %vm474_vm2, %v608_v9, 0.0  ;;  %1178 = vmatpush3.msra.mxu0 %v183_v48 }
 0x33a   : > { %v613_v13 = vadd.f32 %v612_v12, %v611_v11  ;;  %1179 = vmatprep.subr.mxu0 %v1264_v0 }
 0x33b   : > { %1180 = vmatpush3.msra.mxu0 %v182_v49 }
 0x33c   : > { %v615_v15 = vadd.f32 %v614_v14, %v613_v13  ;;  %1181 = vmatprep.subr.mxu0 %v1264_v0 }
 0x33d   : > { %1182 = vmatpush3.msra.mxu0 %v181_v50 }
 0x33e   : > { %v616_v16 = vrot.slane %v615_v15, 4  ;;  %1183 = vmatprep.subr.mxu0 %v1264_v0 }
 0x340   : > { %v617_v25 = vadd.f32 %v616_v16, %v615_v15 }
 0x342   : > { %v618_v27 = vrot.slane %v617_v25, 2 }
 0x344   : > { %v619_v23 = vadd.f32 %v618_v27, %v617_v25 }
 0x346   : > { %v620_v28 = vrot.slane %v619_v23, 1 }
 0x348   : > { %v621_v24 = vadd.f32 %v620_v28, %v619_v23 }
 0x34a   : > { %v622_v30 = vmax.f32 %v621_v24, 1e-30 }
 0x34c   : > { %1221 = vrcp.f32 %v622_v30 }
 0x359   : > { %v1222_v29 = vpop.eup %1221 }
 0x35a   : > { %v625_v31 = vmul.f32 %v1222_v29, %v606_v5  ;;  %v624_v26 = vmul.f32 %v1222_v29, %v605_v3  ;;  %v626_v32 = vmul.f32 %v1222_v29, %v607_v7  ;;  %v627_v33 = vmul.f32 %v1222_v29, %v608_v9 }
 0x35c   : > { %1136 = vmatprep.mubr.msk.f32.mxu1 %vm474_vm2, %v624_v26 }
 0x35d   : > { %1137 = vmatmul.mubr.msk.f32.vlgmr.msra.gmra.mxu1 %vm474_vm2, %v625_v31 }
 0x35e   : > { %1139 = vmatprep.mubr.msk.f32.mxu1 %vm474_vm2, %v626_v32 }
 0x361   : > { %1140 = vmatmul.mubr.msk.f32.gmra.mxu1 %vm474_vm2, %v627_v33 }
 0x362   : > { %1150 = vmatprep.mubr.msk.f32.mxu1 %vm1265_vm0, %v1264_v0 }
 0x41d   : > { %v1138_v51 = vpop.f32.mrf.mxu1 }
 0x41e   : > { %v726_v56 = vmul.f32 %v1138_v51, %v1372_v38 }
 0x41f   : > { %v706_v52 = vpop.f32.mrf.mxu1 }
 0x420   : > { %v725_v57 = vmul.f32 %v706_v52, %v1374_v40 }
 0x421   : > { %v1141_v53 = vpop.f32.mrf.mxu1 }
 0x422   : > { %v728_v54 = vmul.f32 %v1141_v53, %v1376_v43  ;;  %v180_v43 = vld [vmem:[#allocation2 + $0x80] sm:$0xff] }
 0x423   : > { %v716_v22 = vpop.f32.mrf.mxu1  ;;  %1184 = vmatpush3.msra.mxu0 %v180_v43 }
 0x424   : > { %v727_v55 = vmul.f32 %v716_v22, %v1378_v44  ;;  %1143 = vmatpush3.msra.mxu1 %v728_v54 }
 0x425   : > { %1144 = vmatprep.subr.mxu1 %v1264_v0 }
 0x426   : > { %1145 = vmatpush3.msra.mxu1 %v727_v55 }
 0x427   : > { %1146 = vmatprep.subr.mxu1 %v1264_v0 }
 0x428   : > { %1147 = vmatpush3.msra.mxu1 %v726_v56 }
 0x429   : > { %1148 = vmatprep.subr.mxu1 %v1264_v0 }
 0x42a   : > { %1149 = vmatpush3.msra.mxu1 %v725_v57 }
 0x42b   : > { %1151 = vmatmul.mubr.msk.f32.vlgmr.msra.gmra.mxu1 %vm474_vm2, %v213_v58 }
 0x4eb   : > { %v798_v44 = vpop.f32.mrf.mxu1 }
 0x4ec   : > { %1186 = vmatmul.mubr.f32.vlgmr.msra.gmra.mxu0 %v798_v44 }
 0x4ed   : > { %v1152_v59 = vpop.f32.mrf.mxu1 }
 0x5ac   : > { %v872_v60 = vpop.f32.mrf.mxu0 }
 0x5ad   : > { %v873_v38 = vadd.f32 %v872_v60, %v1389_v18 }
 0x5ae   : > { %v1187_v61 = vpop.f32.mrf.mxu0 }
 0x5af   : > { %v876_v62 = vadd.f32 %v873_v38, %v1337_v17 }
 0x5b1   : > { %877 = vst [vmem:[%s1397_s26] sm:$0xff] %v876_v62 }
 0x5b2 PF: > { %s13_s9 = sadd.s32 1, %s1259_s9  }
 0x5b3   : > { %p10_p1 = scmp.ge.s32.totalorder %s13_s9, 4  }
 0x5b5   :  { %12 = sbr.rel (!%p10_p1) target bundleno = 1 (0x1), region = 63 }
 0x5ba   :  { %911 = vsyncpa [#allocation3], 1 }
 0x5bb   :  { %913 = vsyncpa [#allocation3 + $0x1], 1 }

</bundles_post_ra>
